<compile_context>
chip_gen: v7x
topology: tpu7x:2x2x1
jax: 0.10.0
libtpu: 0.0.40
codegen_flags: <defaults>
</compile_context>

<pallas_src>
import functools
import math

import jax
import jax.numpy as jnp
from jax.experimental import pallas as pl
from jax.experimental.pallas import tpu as pltpu


def _mha_group_kernel(x_ref, w_ref, b_ref, o_ref, *, heads_per_group, head_size):
    # x_ref : (Bb, S, D)       activations for this batch block (compute dtype)
    # w_ref : (1, D, 3*gw)     this head-group's fused [Q | K | V] weights
    # b_ref : (1, 1, 3*gw)     this head-group's fused bias (f32)
    # o_ref : (Bb, S, gw)      lane-dense output block (gw % 128 == 0 or gw == D)
    Bb, S, D = x_ref.shape
    gw = heads_per_group * head_size

    x2 = x_ref[...].reshape(Bb * S, D)          # merge batch/seq -> wide M
    w = w_ref[0]                                 # (D, 3*gw)
    b = b_ref[0].astype(jnp.float32)             # (1, 3*gw)

    # Single MXU matmul for this group's Q/K/V projection; f32 accumulation.
    qkv = jnp.dot(x2, w, preferred_element_type=jnp.float32) + b   # (Bb*S, 3gw)
    # One cast to the compute dtype; per-head slices below are static.
    qkv_c = qkv.astype(x2.dtype)

    outs = []
    for h in range(heads_per_group):            # tiny static loop (<= ~4 heads)
        lo = h * head_size
        q_h = qkv_c[:, lo:lo + head_size].reshape(Bb, S, head_size)
        k_h = qkv_c[:, gw + lo:gw + lo + head_size].reshape(Bb, S, head_size)
        v_h = qkv_c[:, 2 * gw + lo:2 * gw + lo + head_size].reshape(Bb, S, head_size)

        # scores = Q @ K^T (1/sqrt(Hd) already folded into Wq/bq on the host).
        s = jnp.einsum('bqd,bkd->bqk', q_h, k_h,
                       preferred_element_type=jnp.float32)          # (Bb,S,S) f32

        # Numerically stable softmax (f32); EUP approximate reciprocal.
        m = jnp.max(s, axis=-1, keepdims=True)
        e = jnp.exp(s - m)
        p = e * pl.reciprocal(jnp.sum(e, axis=-1, keepdims=True), approx=True)

        outs.append(jnp.einsum('bqk,bkd->bqd', p.astype(qkv_c.dtype), v_h,
                               preferred_element_type=jnp.float32))  # (Bb,S,Hd)

    out_g = outs[0] if len(outs) == 1 else jnp.concatenate(outs, axis=-1)
    # ONE full-width lane-dense store for the whole head group.
    o_ref[...] = out_g.astype(o_ref.dtype)


def _pick_heads_per_group(H, Hd, D, S):
    """Heads processed per grid step.  Group lane width gw = hg*Hd must be a
    multiple of 128 (lane-dense output blocks / unmasked stores) unless it
    spans all of D.  Prefer 3*gw % 256 == 0 (full-width MXU N passes on the
    grouped QKV projection) and keep the per-step f32 (S,S) score tiles modest."""
    if D <= 256:
        return H                                 # single static group, gw == D
    budget = 8 << 20                             # f32 score-tile budget per step
    candidates = [hg for hg in range(1, H + 1)
                  if H % hg == 0 and (hg * Hd) % 128 == 0]
    if not candidates:
        return H                                 # odd head size: one fused group
    def fits(hg):
        return hg * S * S * 4 <= budget
    best = None
    for hg in candidates:
        if (3 * hg * Hd) % 256 == 0 and hg * Hd <= 512 and fits(hg):
            best = hg                            # keep the largest qualifying
    if best is None:
        for hg in candidates:
            if hg * Hd <= 512 and fits(hg):
                best = hg
    return best if best is not None else candidates[0]


def _pick_block_b(B, S, D, itemsize):
    """Batch rows packed per grid step: amortize ~0.35us/step overhead on tiny
    rows, but keep >= 2 grid steps along the batch axis when B > 1 so both
    v7x TensorCores get work even with a single head group."""
    target_rows = max(1, (256 * 1024) // max(1, S * D * itemsize))
    max_bb = B if B == 1 else max(1, B // 2)
    bb = min(target_rows, max_bb)
    while B % bb:
        bb -= 1
    return max(bb, 1)


def multi_head_attention(x, wq, wk, wv, bq, bk, bv, *,
                         compute_dtype=jnp.bfloat16,
                         block_b=None, heads_per_group=None):
    """x: (B, S, D); wq/wk/wv: (H, D, Hd); bq/bk/bv: (H, Hd). Returns (B, S, D)."""
    B, S, D = x.shape
    H, D2, Hd = wq.shape
    assert D2 == D and H * Hd == D, "hidden dim must equal num_heads * head_size"

    hg = heads_per_group if heads_per_group is not None else _pick_heads_per_group(H, Hd, D, S)
    assert H % hg == 0
    ng = H // hg                                  # number of head groups
    gw = hg * Hd                                  # group lane width
    assert gw % 128 == 0 or gw == D

    c_sz = jnp.dtype(compute_dtype).itemsize
    o_sz = jnp.dtype(x.dtype).itemsize
    Bb = block_b if block_b is not None else _pick_block_b(B, S, D, c_sz)
    assert B % Bb == 0

    # Fold the 1/sqrt(Hd) attention-score scale into the Q projection (free).
    scale = 1.0 / math.sqrt(Hd)

    def group_w(w):                               # (H, D, Hd) -> (ng, D, gw)
        return w.reshape(ng, hg, D, Hd).transpose(0, 2, 1, 3).reshape(ng, D, gw)

    def group_b(b):                               # (H, Hd) -> (ng, 1, gw)
        return b.reshape(ng, gw).reshape(ng, 1, gw)

    # Per-group fused [Q | K | V] weights/bias; head order inside a group and
    # group order across lanes match torch.cat(head_outputs, dim=-1).
    w_fused = jnp.concatenate(
        [group_w(wq * scale), group_w(wk), group_w(wv)],
        axis=-1).astype(compute_dtype)            # (ng, D, 3*gw)
    b_fused = jnp.concatenate(
        [group_b(bq * scale), group_b(bk), group_b(bv)],
        axis=-1).astype(jnp.float32)              # (ng, 1, 3*gw)

    x_c = x.astype(compute_dtype)                 # MXU operands in bf16 by default

    # Scoped-VMEM budget from the actual working set (double-buffered blocks,
    # f32 qkv + its compute-dtype copy, per-head score/prob tiles) + headroom.
    work = (2 * Bb * S * D * c_sz                 # x block
            + 2 * D * 3 * gw * c_sz               # group weight block
            + 2 * 3 * gw * 4                      # group bias block
            + 2 * Bb * S * gw * o_sz              # output block
            + Bb * S * 3 * gw * (4 + c_sz)        # qkv f32 + compute-dtype copy
            + 2 * hg * Bb * S * S * 4             # scores / probs (f32)
            + hg * Bb * S * Hd * 4)               # per-head outputs pre-concat
    vmem_limit = int(min(max(2 * work + (4 << 20), 16 << 20), 64 << 20))

    kernel = functools.partial(_mha_group_kernel,
                               heads_per_group=hg, head_size=Hd)

    return pl.pallas_call(
        kernel,
        out_shape=jax.ShapeDtypeStruct((B, S, D), x.dtype),
        grid_spec=pltpu.PrefetchScalarGridSpec(
            num_scalar_prefetch=0,
            grid=(B // Bb, ng),
            in_specs=[
                pl.BlockSpec((Bb, S, D), lambda b, g: (b, 0, 0)),      # x (resident across g)
                pl.BlockSpec((1, D, 3 * gw), lambda b, g: (g, 0, 0)),  # group weights
                pl.BlockSpec((1, 1, 3 * gw), lambda b, g: (g, 0, 0)),  # group bias
            ],
            out_specs=pl.BlockSpec((Bb, S, gw), lambda b, g: (b, 0, g)),  # lane-dense
        ),
        compiler_params=pltpu.CompilerParams(
            dimension_semantics=("parallel", "parallel"),
            vmem_limit_bytes=vmem_limit),
    )(x_c, w_fused, b_fused)


def _reference(x, wq, wk, wv, bq, bk, bv):
    """Pure-JAX reference matching the PyTorch module semantics."""
    H, D, Hd = wq.shape
    outs = []
    for h in range(H):
        q = x @ wq[h] + bq[h]
        k = x @ wk[h] + bk[h]
        v = x @ wv[h] + bv[h]
        s = (q @ jnp.swapaxes(k, -1, -2)) / math.sqrt(Hd)
        p = jax.nn.softmax(s, axis=-1)
        outs.append(p @ v)
    return jnp.concatenate(outs, axis=-1)


if __name__ == "__main__":
    # Small shapes consistent with the module (D divisible by num heads).
    B, S, D, H = 2, 8, 32, 4
    Hd = D // H

    key = jax.random.PRNGKey(0)
    kx, kwq, kwk, kwv, kbq, kbk, kbv = jax.random.split(key, 7)

    x = jax.random.normal(kx, (B, S, D), dtype=jnp.float32)
    scale = 1.0 / math.sqrt(D)
    wq = jax.random.normal(kwq, (H, D, Hd), dtype=jnp.float32) * scale
    wk = jax.random.normal(kwk, (H, D, Hd), dtype=jnp.float32) * scale
    wv = jax.random.normal(kwv, (H, D, Hd), dtype=jnp.float32) * scale
    bq = jax.random.normal(kbq, (H, Hd), dtype=jnp.float32) * scale
    bk = jax.random.normal(kbk, (H, Hd), dtype=jnp.float32) * scale
    bv = jax.random.normal(kbv, (H, Hd), dtype=jnp.float32) * scale

    ref = _reference(x, wq, wk, wv, bq, bk, bv)

    # f32 compute path (exact math modulo the approx softmax reciprocal).
    out_f32 = multi_head_attention(x, wq, wk, wv, bq, bk, bv,
                                   compute_dtype=jnp.float32)
    out_f32 = jax.block_until_ready(out_f32)
    assert out_f32.shape == (B, S, D)
    assert jnp.allclose(out_f32, ref, atol=5e-3, rtol=5e-3), float(
        jnp.max(jnp.abs(out_f32 - ref)))

    # Default bf16 MXU path (f32 accumulation); bf16 rounding is the error.
    out_bf16 = multi_head_attention(x, wq, wk, wv, bq, bk, bv)
    out_bf16 = jax.block_until_ready(out_bf16)
    assert out_bf16.shape == (B, S, D)
    assert jnp.allclose(out_bf16, ref, atol=5e-2, rtol=5e-2), float(
        jnp.max(jnp.abs(out_bf16 - ref)))

    print("KERNEL_OK")
</pallas_src>

<mosaic_0001>
module attributes {stable_mosaic.version = 11 : i64} {
  func.func @_mha_group_kernel(%arg0: i32, %arg1: i32, %arg2: memref<1x8x32xf32, #tpu.memory_space<vmem>>, %arg3: memref<1x32x96xf32, #tpu.memory_space<vmem>>, %arg4: memref<1x1x96xf32, #tpu.memory_space<vmem>>, %arg5: memref<1x8x32xf32, #tpu.memory_space<vmem>>) attributes {dimension_semantics = [#tpu.dimension_semantics<parallel>, #tpu.dimension_semantics<parallel>], iteration_bounds = array<i64: 2, 1>, scalar_prefetch = 0 : i64, scratch_operands = 0 : i64, tpu.core_type = #tpu.core_type<tc>, window_params = [{transform_indices = @transform_0, window_bounds = array<i64: 1, 8, 32>}, {transform_indices = @transform_1, window_bounds = array<i64: 1, 32, 96>}, {transform_indices = @transform_2, window_bounds = array<i64: 1, 1, 96>}, {transform_indices = @transform_3, window_bounds = array<i64: 1, 8, 32>}]} {
    %c0 = arith.constant 0 : index
    %c0_0 = arith.constant 0 : index
    %c0_1 = arith.constant 0 : index
    %0 = vector.load %arg2[%c0, %c0_0, %c0_1] : memref<1x8x32xf32, #tpu.memory_space<vmem>>, vector<1x8x32xf32>
    %1 = vector.shape_cast %0 : vector<1x8x32xf32> to vector<8x32xf32>
    %c0_2 = arith.constant 0 : index
    %c0_3 = arith.constant 0 : index
    %c0_4 = arith.constant 0 : index
    %2 = vector.load %arg3[%c0_2, %c0_3, %c0_4] : memref<1x32x96xf32, #tpu.memory_space<vmem>>, vector<1x32x96xf32>
    %3 = vector.shape_cast %2 : vector<1x32x96xf32> to vector<32x96xf32>
    %c0_5 = arith.constant 0 : index
    %c0_6 = arith.constant 0 : index
    %c0_7 = arith.constant 0 : index
    %4 = vector.load %arg4[%c0_5, %c0_6, %c0_7] : memref<1x1x96xf32, #tpu.memory_space<vmem>>, vector<1x1x96xf32>
    %5 = vector.shape_cast %4 : vector<1x1x96xf32> to vector<1x96xf32>
    %cst = arith.constant dense<0.000000e+00> : vector<8x96xf32>
    %6 = tpu.matmul %1, %3, %cst {dimension_numbers = #tpu.dot_dimension_numbers<[1], [0], [0], [1], [0, 0, 1, 1], [], []>} : vector<8x32xf32>, vector<32x96xf32>, vector<8x96xf32> -> vector<8x96xf32>
    %7 = vector.broadcast %5 : vector<1x96xf32> to vector<8x96xf32>
    %8 = arith.addf %6, %7 : vector<8x96xf32>
    %9 = vector.extract_strided_slice %8 {offsets = [0, 0], sizes = [8, 8], strides = [1, 1]} : vector<8x96xf32> to vector<8x8xf32>
    %10 = vector.shape_cast %9 : vector<8x8xf32> to vector<1x8x8xf32>
    %11 = vector.extract_strided_slice %8 {offsets = [0, 32], sizes = [8, 8], strides = [1, 1]} : vector<8x96xf32> to vector<8x8xf32>
    %12 = vector.shape_cast %11 : vector<8x8xf32> to vector<1x8x8xf32>
    %13 = vector.extract_strided_slice %8 {offsets = [0, 64], sizes = [8, 8], strides = [1, 1]} : vector<8x96xf32> to vector<8x8xf32>
    %14 = vector.shape_cast %13 : vector<8x8xf32> to vector<1x8x8xf32>
    "tpu.trace_start"() <{level = 10 : i32, message = "bqd,bkd->bqk"}> : () -> ()
    %cst_8 = arith.constant dense<0.000000e+00> : vector<1x8x8xf32>
    %15 = tpu.matmul %10, %12, %cst_8 {dimension_numbers = #tpu.dot_dimension_numbers<[2], [2], [1], [1], [0, 0, 0, 1, 1, 1], [0], [0]>} : vector<1x8x8xf32>, vector<1x8x8xf32>, vector<1x8x8xf32> -> vector<1x8x8xf32>
    "tpu.trace_stop"() : () -> ()
    %cst_9 = arith.constant dense<0xFF800000> : vector<1x8xf32>
    %16 = vector.multi_reduction <maximumf>, %15, %cst_9 [2] : vector<1x8x8xf32> to vector<1x8xf32>
    %17 = vector.shape_cast %16 : vector<1x8xf32> to vector<1x8x1xf32>
    %18 = vector.broadcast %17 : vector<1x8x1xf32> to vector<1x8x8xf32>
    %19 = arith.subf %15, %18 : vector<1x8x8xf32>
    %20 = math.exp %19 : vector<1x8x8xf32>
    %cst_10 = arith.constant dense<0.000000e+00> : vector<1x8xf32>
    %21 = vector.multi_reduction <add>, %20, %cst_10 [2] : vector<1x8x8xf32> to vector<1x8xf32>
    %22 = vector.shape_cast %21 : vector<1x8xf32> to vector<1x8x1xf32>
    %23 = tpu.reciprocal %22 {approx = true} : vector<1x8x1xf32> -> vector<1x8x1xf32>
    %24 = vector.broadcast %23 : vector<1x8x1xf32> to vector<1x8x8xf32>
    %25 = arith.mulf %20, %24 : vector<1x8x8xf32>
    "tpu.trace_start"() <{level = 10 : i32, message = "bqk,bkd->bqd"}> : () -> ()
    %cst_11 = arith.constant dense<0.000000e+00> : vector<1x8x8xf32>
    %26 = tpu.matmul %25, %14, %cst_11 {dimension_numbers = #tpu.dot_dimension_numbers<[2], [1], [1], [2], [0, 0, 0, 1, 1, 2], [0], [0]>} : vector<1x8x8xf32>, vector<1x8x8xf32>, vector<1x8x8xf32> -> vector<1x8x8xf32>
    "tpu.trace_stop"() : () -> ()
    %27 = vector.extract_strided_slice %8 {offsets = [0, 8], sizes = [8, 8], strides = [1, 1]} : vector<8x96xf32> to vector<8x8xf32>
    %28 = vector.shape_cast %27 : vector<8x8xf32> to vector<1x8x8xf32>
    %29 = vector.extract_strided_slice %8 {offsets = [0, 40], sizes = [8, 8], strides = [1, 1]} : vector<8x96xf32> to vector<8x8xf32>
    %30 = vector.shape_cast %29 : vector<8x8xf32> to vector<1x8x8xf32>
    %31 = vector.extract_strided_slice %8 {offsets = [0, 72], sizes = [8, 8], strides = [1, 1]} : vector<8x96xf32> to vector<8x8xf32>
    %32 = vector.shape_cast %31 : vector<8x8xf32> to vector<1x8x8xf32>
    "tpu.trace_start"() <{level = 10 : i32, message = "bqd,bkd->bqk"}> : () -> ()
    %cst_12 = arith.constant dense<0.000000e+00> : vector<1x8x8xf32>
    %33 = tpu.matmul %28, %30, %cst_12 {dimension_numbers = #tpu.dot_dimension_numbers<[2], [2], [1], [1], [0, 0, 0, 1, 1, 1], [0], [0]>} : vector<1x8x8xf32>, vector<1x8x8xf32>, vector<1x8x8xf32> -> vector<1x8x8xf32>
    "tpu.trace_stop"() : () -> ()
    %cst_13 = arith.constant dense<0xFF800000> : vector<1x8xf32>
    %34 = vector.multi_reduction <maximumf>, %33, %cst_13 [2] : vector<1x8x8xf32> to vector<1x8xf32>
    %35 = vector.shape_cast %34 : vector<1x8xf32> to vector<1x8x1xf32>
    %36 = vector.broadcast %35 : vector<1x8x1xf32> to vector<1x8x8xf32>
    %37 = arith.subf %33, %36 : vector<1x8x8xf32>
    %38 = math.exp %37 : vector<1x8x8xf32>
    %cst_14 = arith.constant dense<0.000000e+00> : vector<1x8xf32>
    %39 = vector.multi_reduction <add>, %38, %cst_14 [2] : vector<1x8x8xf32> to vector<1x8xf32>
    %40 = vector.shape_cast %39 : vector<1x8xf32> to vector<1x8x1xf32>
    %41 = tpu.reciprocal %40 {approx = true} : vector<1x8x1xf32> -> vector<1x8x1xf32>
    %42 = vector.broadcast %41 : vector<1x8x1xf32> to vector<1x8x8xf32>
    %43 = arith.mulf %38, %42 : vector<1x8x8xf32>
    "tpu.trace_start"() <{level = 10 : i32, message = "bqk,bkd->bqd"}> : () -> ()
    %cst_15 = arith.constant dense<0.000000e+00> : vector<1x8x8xf32>
    %44 = tpu.matmul %43, %32, %cst_15 {dimension_numbers = #tpu.dot_dimension_numbers<[2], [1], [1], [2], [0, 0, 0, 1, 1, 2], [0], [0]>} : vector<1x8x8xf32>, vector<1x8x8xf32>, vector<1x8x8xf32> -> vector<1x8x8xf32>
    "tpu.trace_stop"() : () -> ()
    %45 = vector.extract_strided_slice %8 {offsets = [0, 16], sizes = [8, 8], strides = [1, 1]} : vector<8x96xf32> to vector<8x8xf32>
    %46 = vector.shape_cast %45 : vector<8x8xf32> to vector<1x8x8xf32>
    %47 = vector.extract_strided_slice %8 {offsets = [0, 48], sizes = [8, 8], strides = [1, 1]} : vector<8x96xf32> to vector<8x8xf32>
    %48 = vector.shape_cast %47 : vector<8x8xf32> to vector<1x8x8xf32>
    %49 = vector.extract_strided_slice %8 {offsets = [0, 80], sizes = [8, 8], strides = [1, 1]} : vector<8x96xf32> to vector<8x8xf32>
    %50 = vector.shape_cast %49 : vector<8x8xf32> to vector<1x8x8xf32>
    "tpu.trace_start"() <{level = 10 : i32, message = "bqd,bkd->bqk"}> : () -> ()
    %cst_16 = arith.constant dense<0.000000e+00> : vector<1x8x8xf32>
    %51 = tpu.matmul %46, %48, %cst_16 {dimension_numbers = #tpu.dot_dimension_numbers<[2], [2], [1], [1], [0, 0, 0, 1, 1, 1], [0], [0]>} : vector<1x8x8xf32>, vector<1x8x8xf32>, vector<1x8x8xf32> -> vector<1x8x8xf32>
    "tpu.trace_stop"() : () -> ()
    %cst_17 = arith.constant dense<0xFF800000> : vector<1x8xf32>
    %52 = vector.multi_reduction <maximumf>, %51, %cst_17 [2] : vector<1x8x8xf32> to vector<1x8xf32>
    %53 = vector.shape_cast %52 : vector<1x8xf32> to vector<1x8x1xf32>
    %54 = vector.broadcast %53 : vector<1x8x1xf32> to vector<1x8x8xf32>
    %55 = arith.subf %51, %54 : vector<1x8x8xf32>
    %56 = math.exp %55 : vector<1x8x8xf32>
    %cst_18 = arith.constant dense<0.000000e+00> : vector<1x8xf32>
    %57 = vector.multi_reduction <add>, %56, %cst_18 [2] : vector<1x8x8xf32> to vector<1x8xf32>
    %58 = vector.shape_cast %57 : vector<1x8xf32> to vector<1x8x1xf32>
    %59 = tpu.reciprocal %58 {approx = true} : vector<1x8x1xf32> -> vector<1x8x1xf32>
    %60 = vector.broadcast %59 : vector<1x8x1xf32> to vector<1x8x8xf32>
    %61 = arith.mulf %56, %60 : vector<1x8x8xf32>
    "tpu.trace_start"() <{level = 10 : i32, message = "bqk,bkd->bqd"}> : () -> ()
    %cst_19 = arith.constant dense<0.000000e+00> : vector<1x8x8xf32>
    %62 = tpu.matmul %61, %50, %cst_19 {dimension_numbers = #tpu.dot_dimension_numbers<[2], [1], [1], [2], [0, 0, 0, 1, 1, 2], [0], [0]>} : vector<1x8x8xf32>, vector<1x8x8xf32>, vector<1x8x8xf32> -> vector<1x8x8xf32>
    "tpu.trace_stop"() : () -> ()
    %63 = vector.extract_strided_slice %8 {offsets = [0, 24], sizes = [8, 8], strides = [1, 1]} : vector<8x96xf32> to vector<8x8xf32>
    %64 = vector.shape_cast %63 : vector<8x8xf32> to vector<1x8x8xf32>
    %65 = vector.extract_strided_slice %8 {offsets = [0, 56], sizes = [8, 8], strides = [1, 1]} : vector<8x96xf32> to vector<8x8xf32>
    %66 = vector.shape_cast %65 : vector<8x8xf32> to vector<1x8x8xf32>
    %67 = vector.extract_strided_slice %8 {offsets = [0, 88], sizes = [8, 8], strides = [1, 1]} : vector<8x96xf32> to vector<8x8xf32>
    %68 = vector.shape_cast %67 : vector<8x8xf32> to vector<1x8x8xf32>
    "tpu.trace_start"() <{level = 10 : i32, message = "bqd,bkd->bqk"}> : () -> ()
    %cst_20 = arith.constant dense<0.000000e+00> : vector<1x8x8xf32>
    %69 = tpu.matmul %64, %66, %cst_20 {dimension_numbers = #tpu.dot_dimension_numbers<[2], [2], [1], [1], [0, 0, 0, 1, 1, 1], [0], [0]>} : vector<1x8x8xf32>, vector<1x8x8xf32>, vector<1x8x8xf32> -> vector<1x8x8xf32>
    "tpu.trace_stop"() : () -> ()
    %cst_21 = arith.constant dense<0xFF800000> : vector<1x8xf32>
    %70 = vector.multi_reduction <maximumf>, %69, %cst_21 [2] : vector<1x8x8xf32> to vector<1x8xf32>
    %71 = vector.shape_cast %70 : vector<1x8xf32> to vector<1x8x1xf32>
    %72 = vector.broadcast %71 : vector<1x8x1xf32> to vector<1x8x8xf32>
    %73 = arith.subf %69, %72 : vector<1x8x8xf32>
    %74 = math.exp %73 : vector<1x8x8xf32>
    %cst_22 = arith.constant dense<0.000000e+00> : vector<1x8xf32>
    %75 = vector.multi_reduction <add>, %74, %cst_22 [2] : vector<1x8x8xf32> to vector<1x8xf32>
    %76 = vector.shape_cast %75 : vector<1x8xf32> to vector<1x8x1xf32>
    %77 = tpu.reciprocal %76 {approx = true} : vector<1x8x1xf32> -> vector<1x8x1xf32>
    %78 = vector.broadcast %77 : vector<1x8x1xf32> to vector<1x8x8xf32>
    %79 = arith.mulf %74, %78 : vector<1x8x8xf32>
    "tpu.trace_start"() <{level = 10 : i32, message = "bqk,bkd->bqd"}> : () -> ()
    %cst_23 = arith.constant dense<0.000000e+00> : vector<1x8x8xf32>
    %80 = tpu.matmul %79, %68, %cst_23 {dimension_numbers = #tpu.dot_dimension_numbers<[2], [1], [1], [2], [0, 0, 0, 1, 1, 2], [0], [0]>} : vector<1x8x8xf32>, vector<1x8x8xf32>, vector<1x8x8xf32> -> vector<1x8x8xf32>
    "tpu.trace_stop"() : () -> ()
    %81 = tpu.concatenate %26, %44, %62, %80 in 2 : vector<1x8x8xf32>, vector<1x8x8xf32>, vector<1x8x8xf32>, vector<1x8x8xf32> -> vector<1x8x32xf32>
    %c0_24 = arith.constant 0 : index
    %c0_25 = arith.constant 0 : index
    %c0_26 = arith.constant 0 : index
    %82 = vector.load %arg5[%c0_24, %c0_25, %c0_26] : memref<1x8x32xf32, #tpu.memory_space<vmem>>, vector<1x8x32xf32>
    tpu.vector_store %arg5[%c0_24, %c0_25, %c0_26], %81 {strides = array<i32>} : memref<1x8x32xf32, #tpu.memory_space<vmem>>, vector<1x8x32xf32>,
    return
  }
  func.func @transform_0(%arg0: i32, %arg1: i32) -> (i32, i32, i32) {
    %c0_i32 = arith.constant 0 : i32
    %c0_i32_0 = arith.constant 0 : i32
    %c0_i32_1 = arith.constant 0 : i32
    return %arg0, %c0_i32, %c0_i32_0 : i32, i32, i32
  }
  func.func @transform_1(%arg0: i32, %arg1: i32) -> (i32, i32, i32) {
    %c0_i32 = arith.constant 0 : i32
    %c0_i32_0 = arith.constant 0 : i32
    %c0_i32_1 = arith.constant 0 : i32
    return %arg1, %c0_i32, %c0_i32_0 : i32, i32, i32
  }
  func.func @transform_2(%arg0: i32, %arg1: i32) -> (i32, i32, i32) {
    %c0_i32 = arith.constant 0 : i32
    %c0_i32_0 = arith.constant 0 : i32
    %c0_i32_1 = arith.constant 0 : i32
    return %arg1, %c0_i32, %c0_i32_0 : i32, i32, i32
  }
  func.func @transform_3(%arg0: i32, %arg1: i32) -> (i32, i32, i32) {
    %c0_i32 = arith.constant 0 : i32
    %c0_i32_0 = arith.constant 0 : i32
    return %arg0, %c0_i32, %arg1 : i32, i32, i32
  }
}

</mosaic_0001>

<bundles_post_ra>
// kernel: tpu_custom_call.1
= control target key start
LH: loop header
LB: loop body
LE: loop exit
PB: predicated region body
PF: predicated region fallthrough
CT: control target
= control target key end

     0   :  { %8 = vsyncpa [#allocation3], 0  ;;  %s1807_s0 = inlined_call_operand.hbm [shape: f32[2,8,32], index: 0, kind: input, shape index: {}]   ;;  %s1808_s1 = inlined_call_operand.hbm [shape: f32[1,32,96], index: 1, kind: input, shape index: {}]   ;;  %s1809_s2 = inlined_call_operand.vmem [shape: f32[1,1,96], index: 2, kind: input, shape index: {}]   ;;  %s1810_s3 = inlined_call_operand.hbm [shape: f32[2,8,32], index: 3, kind: output, shape index: {}]  }
   0x1   :  { %10 = vsyncpa [#allocation3 + $0x1], 0 }
   0x2   :  { %11 = vsyncpa [#allocation6], 0 }
   0x3   :  { %12 = vsyncpa [#allocation4], 0 }
   0x4   :  { %14 = vsyncpa [#allocation4 + $0x1], 0  ;;  %s1523_s12 = smov 0   ;;  %s1525_s13 = smov 0  }
   0x5   :  { %s1527_s14 = smov 0   ;;  %s1529_s15 = smov 0  }
   0x6   :  { %s1531_s16 = smov 0   ;;  %s1533_s17 = smov 0  }
   0x7 LB: > { %s1119_s18 = sadd.s32 4294967295, %s1479_s17   ;;  %s1120_s19 = sadd.s32 4294967294, %s1479_s17   ;;  %s1479_s17 = sphi %s1533_s17, %s20_s17   ;;  %s1475_s16 = sphi %s1531_s16, %s1834_s16   ;;  %s1471_s15 = sphi %s1529_s15, %s1833_s15   ;;  %s1467_s14 = sphi %s1527_s14, %s1832_s14   ;;  %s1463_s13 = sphi %s1525_s13, %s1831_s13   ;;  %s1459_s12 = sphi %s1523_s12, %s1830_s12  }
   0x8   : > { %p52_p0 = scmp.ne.s32.totalorder %s1463_s13, %s1459_s12  ;;  %p1557_p1 = scmp.eq.s32.totalorder %s1119_s18, 0 }
   0x9   : > { %p1561_p2 = scmp.eq.s32.totalorder %s1119_s18, 1  ;;  %p136_p3 = scmp.eq.s32.totalorder %s1120_s19, 1 }
   0xa   : > { %s1815_s20 = scalar_select %p1557_p1, 1, 0 }
   0xb   : > { %s1816_s21 = scalar_select %p1561_p2, 1, 0 }
   0xc   : > { %p1567_p4 = por %p1557_p1, %p52_p0  ;;  %p1121_p5 = scmp.ge.s32.totalorder %s1479_s17, 1 }
   0xd   : > { %p1572_p6 = por %p136_p3, %p52_p0  ;;  %p143_p7 = scmp.lt.s32.totalorder %s1479_s17, 3 }
   0xe   : > { %s1817_s22 = scalar_select %p1567_p4, 1, 0 }
   0xf   : > { %s1818_s23 = scalar_select %p1572_p6, 1, 0 }
  0x10   : > { %p1577_p8 = pnand %p1121_p5, %p143_p7  ;;  %s1481_s25 = smov [#allocation5]  }
  0x11   : > { %s158_s26 = sshll.u32 %s1481_s25, 4  ;;  %s32_s28 = sadd.s32 1, %s1475_s16  ;;  %s159_s26 = int_to_ptr.vmem [resolvable:$true] %s158_s26 }
  0x12   : > { %s1819_s24 = scalar_select %p1577_p8, 1, 0 }
  0x13   : > { %p1235_p9 = pneg %p1577_p8  ;;  %s1335_s4 = scalar_lea.hbm %s1808_s1, 512 }
  0x14   : > { %p1336_p12 = scmp.ne.s32.totalorder %s1808_s1, %s1335_s4  ;;  %p1342_p5 = scmp.lt.u32.totalorder %s1335_s4, %s1808_s1 }
  0x15   : > { %p1586_p11 = pnand %p1235_p9, %p1557_p1 }
  0x17   : > { %p1337_p13 = pneg %p1586_p11 }
  0x19   : > { %p1338_p0 = pnand %p1337_p13, %p1336_p12 }
  0x1b   : > { %p1339_p3 = pneg %p1338_p0 }
  0x1d   : > { %p1344_p7 = pnand %p1342_p5, %p1339_p3 }
  0x1f   : > { %1347 = shalt.err (!%p1344_p7)
}
  0x20   : > { %s1348_s9 = scalar_lea.vmem %s159_s26, 512  ;;  %p1356_p1 = scmp.lt.s32.totalorder %s159_s26, %s159_s26 }
  0x21   : > { %p1349_p9 = scmp.ne.s32.totalorder %s159_s26, %s1348_s9  ;;  %p1357_p4 = scmp.lt.s32.totalorder %s1348_s9, %s1348_s9 }
  0x23   : > { %p1351_p10 = pnand %p1349_p9, %p1337_p13  ;;  %p1358_p8 = por %p1357_p4, %p1356_p1 }
  0x25   : > { %p1352_p6 = pneg %p1351_p10 }
  0x27   : > { %p1359_p2 = pnand %p1358_p8, %p1352_p6 }
  0x29   : > { %1362 = shalt.err (!%p1359_p2)
}
  0x2a   : > { %s1482_s10 = smov 128   ;;  %s1483_s11 = smov 8  }
  0x2b   : > { %1238 = dma.hbm_to_vmem [thread:$0]  (!%p1586_p11), %s1808_s1, 512, %s159_s26, [#allocation6], %s1482_s10, %s1482_s10, %s1483_s11  }
  0x2c   : > { %p34_p1 = scmp.ge.s32.totalorder %s32_s28, 2  ;;  %s39_s25 = sadd.s32 1, %s1467_s14 }
  0x2d   : > { %p46_p2 = scmp.ne.s32.totalorder %s1467_s14, %s1463_s13  ;;  %p47_p4 = scmp.eq.s32.totalorder %s1479_s17, 0 }
  0x2e   : > { %s1836_s28 = smov (%p34_p1, %s32_s28), 0  ;;  %p1822_p8 = scmp.ne.s32.totalorder %s1816_s21, 0 }
  0x2f   : > { %p1613_p6 = por %p47_p4, %p46_p2  ;;  %s36_s27 = ssub.s32 %s1475_s16, %s1836_s28 }
  0x30   : > { %p1619_p10 = por %p1822_p8, %p46_p2  ;;  %p1248_p12 = scmp.lt.s32.totalorder %s1479_s17, 2 }
  0x31   : > { %p37_p11 = scmp.eq.s32.totalorder %s36_s27, 0  ;;  %s178_s26 = sand.u32 1, %s1467_s14  }
  0x32   : > { %s1125_s4 = sshll.u32 %s178_s26, 3  ;;  %s1126_s6 = sshll.u32 %s1475_s16, 7 }
  0x33   : > { %s1628_s5 = scalar_select %p37_p11, %s1467_s14, %s39_s25  }
  0x34   : > { %s1634_s9 = scalar_lea.hbm %s1807_s0, %s1126_s6  ;;  %s182_s21 = scalar_lea.vmem [#allocation2], %s1125_s4 }
  0x35   : > { %s189_s10 = sshll.u32 %s182_s21, 4  ;;  %p1640_p13 = pnand %p1248_p12, %p1613_p6  ;;  %s1636_s10 = int_to_ptr.vmem [resolvable:$true] %s189_s10 }
  0x36   : > { %s179_s18 = scalar_lea.sflag [#allocation3], %s178_s26  ;;  %s1363_s19 = scalar_lea.hbm %s1634_s9, 128 }
  0x37   : > { %p1364_p0 = scmp.ne.s32.totalorder %s1634_s9, %s1363_s19  ;;  %p1365_p3 = pneg %p1640_p13 }
  0x38   : > { %s1368_s4 = scalar_lea.hbm %s1807_s0, 256  ;;  %p1369_p9 = scmp.lt.u32.totalorder %s1634_s9, %s1807_s0 }
  0x39   : > { %p1366_p5 = pnand %p1365_p3, %p1364_p0  ;;  %p1370_p1 = scmp.lt.u32.totalorder %s1368_s4, %s1363_s19 }
  0x3a   : > { %p1372_p4 = scmp.lt.u32.totalorder %s1363_s19, %s1634_s9 }
  0x3b   : > { %p1367_p7 = pneg %p1366_p5  ;;  %p1371_p2 = por %p1370_p1, %p1369_p9 }
  0x3d   : > { %p1373_p6 = por %p1372_p4, %p1371_p2 }
  0x3f   : > { %p1374_p8 = pnand %p1373_p6, %p1367_p7 }
  0x41   : > { %1377 = shalt.err (!%p1374_p8)
}
  0x42   : > { %s1378_s26 = scalar_lea.vmem %s1636_s10, 128  ;;  %s1484_s7 = smov [#allocation2]  }
  0x43   : > { %p1379_p12 = scmp.ne.s32.totalorder %s1636_s10, %s1378_s26  ;;  %s1383_s8 = sshll.u32 %s1484_s7, 4  ;;  %s1384_s8 = int_to_ptr.vmem [resolvable:$false] %s1383_s8 }
  0x44   : > { %s1385_s21 = scalar_lea.vmem %s1384_s8, 256  ;;  %p1386_p5 = scmp.lt.s32.totalorder %s1636_s10, %s1384_s8 }
  0x45   : > { %p1381_p11 = pnand %p1379_p12, %p1365_p3  ;;  %p1387_p9 = scmp.lt.s32.totalorder %s1385_s21, %s1378_s26 }
  0x47   : > { %p1382_p0 = pneg %p1381_p11  ;;  %p1388_p1 = por %p1387_p9, %p1386_p5 }
  0x49   : > { %p1389_p2 = pnand %p1388_p1, %p1382_p0 }
  0x4b   : > { %1392 = shalt.err (!%p1389_p2)
}
  0x4c   : > { %1242 = dma.hbm_to_vmem [thread:$0]  (!%p1640_p13), %s1634_s9, 128, %s1636_s10, %s179_s18  }
  0x4d   : > { %p1825_p7 = scmp.ne.s32.totalorder %s1819_s24, 0 }
  0x4e   : > { %s1672_s19 = sand.u32 (!%p1825_p7), 1, %s1463_s13   ;;  %p1826_p3 = scmp.ne.s32.totalorder (!%p1825_p7), %s1817_s22, 0 }
  0x4f   : > { %198 = sbr.rel (%p1825_p7) target bundleno = 1358 (0x54e), region = 32  ;;  %s1128_s25 = sshll.u32 (!%p1825_p7), %s1672_s19, 3 }
  0x50   : > { %s201_s27 = scalar_lea.sflag (!%p1825_p7), [#allocation3], %s1672_s19  ;;  %s204_s4 = scalar_lea.vmem (!%p1825_p7), [#allocation2], %s1128_s25 }
  0x56   : > { %1446 = dma.done.wait (%p1826_p3), %s201_s27, 128  }
  0x57   : > { %1448 = vsyncadd (%p1826_p3), %s201_s27, 4294967168  ;;  %p1827_p13 = scmp.ne.s32.totalorder %s1815_s20, 0 }
  0x59   : > { %1450 = dma.done.wait (%p1827_p13), [#allocation6], 512  }
  0x5a   : > { %1452 = vsyncadd (%p1827_p13), [#allocation6], 4294966784  ;;  %v1485_v0 = vmov 0.0|0.0   ;;  %vm1486_vm0 = vmmov 0   ;;  %v1487_v1 = vmov 0.0   ;;  %v238_v2 = vld [vmem:[#allocation5] sm:$0xff] }
  0x5b   : > { %1221 = vmatprep.subr.bf16.mxu0 %v1485_v0  ;;  %1178 = vmatprep.mubr.msk.f32.mxu0 %vm1486_vm0, %v1487_v1  ;;  %v239_v3 = vld [vmem:[#allocation5 + $0x8] sm:$0xff]  ;;  %v240_v4 = vld [vmem:[#allocation5 + $0x10] sm:$0xff]  ;;  %v241_v6 = vld [vmem:[#allocation5 + $0x18] sm:$0xff]  ;;  %vm249_vm1 = vcmask 261120   ;;  %s1488_s24 = smov 120   ;;  %s1489_s9 = smov 96  }
  0x5c   : > { %1181 = vmatprep.subr.mxu1 %v1487_v1  ;;  %1183 = vmatprep.mubr.msk.f32.mxu1 %vm1486_vm0, %v1487_v1  ;;  %v1222_v5 = vpack.c.bf16 %v239_v3, %v238_v2  ;;  %v1225_v7 = vpack.c.bf16 %v241_v6, %v240_v4  ;;  %v237_v8 = vld [vmem:[%s204_s4] sm:$0xff]  ;;  %s1490_s10 = smov 80   ;;  %s1491_s11 = smov 88   ;;  %vm326_vm2 = vcmask 64512   ;;  %vm996_vm3 = vcmask 130048  }
  0x5d   : > { %v1131_v9 = vld [vmem:[%s1809_s2] ss:$0 sm:$0xff]  ;;  %s1492_s18 = smov 72   ;;  %s1493_s29 = smov 112   ;;  %vm998_vm4 = vcmask 195584  }
  0x5e   : > { %1223 = vmatpush3.bf16.msra.mxu0 %v1222_v5  ;;  %s1494_s6 = smov 104   ;;  %s1495_s26 = smov 56  }
  0x5f   : > { %1224 = vmatprep.subr.bf16.mxu0 %v1485_v0  ;;  %s1496_s7 = smov 64   ;;  %s1497_s8 = smov 48  }
  0x60   : > { %s1498_s21 = smov 40   ;;  %s1499_s27 = smov 8  }
  0x61   : > { %s1500_s4 = smov 16   ;;  %s1501_s20 = smov 24  }
  0x62   : > { %1226 = vmatpush3.bf16.msra.mxu0 %v1225_v7  ;;  %s1146_s22 = sshll.u32 %s1471_s15, 7  ;;  %s1002_s15 = scalar_lea.sflag [#allocation4], %s1672_s19 }
  0x63   : > { %1191 = vmatprep.subr.mxu0 %v1487_v1 }
  0x65   : > { %1179 = vmatmul.mubr.msk.f32.vlgmr.msra.gmra.mrb[0].mxu0 %vm249_vm1, %v237_v8 }
  0x66   : > { %1193 = vmatprep.mubr.msk.f32.mxu0 %vm1486_vm0, %v1487_v1 }
 0x138   : > { %v319_v10 = vpop.f32.mrb[0].mxu0 }
 0x139   : > { %v1698_v11 = vadd.f32 %v1131_v9, %v319_v10  ;;  %v1180_v12 = vpop.f32.mrb[1].mxu0 }
 0x13b   : > { %488 = vrot.lane.b32.xlu1 %v1698_v11, %s1488_s24  ;;  %324 = vrot.lane.b32.xlu0 %v1698_v11, %s1489_s9  ;;  %s233_s24 = scalar_lea.vmem [#allocation7], %s1128_s25 }
 0x13c   : > { %s1016_s9 = sshll.u32 %s233_s24, 4  ;;  %s1759_s9 = int_to_ptr.vmem [resolvable:$true] %s1016_s9 }
 0x13d   : > { %s1393_s25 = scalar_lea.vmem %s1759_s9, 128 }
 0x13e   : > { %p1394_p4 = scmp.ne.s32.totalorder %s1759_s9, %s1393_s25 }
 0x13f   : > { %655 = vrot.lane.b32.xlu1 %v1698_v11, %s1490_s10  ;;  %490 = vrot.lane.b32.xlu0 %v1698_v11, %s1491_s11 }
 0x140   : > { %p1395_p6 = pnand %p1394_p4, %p1619_p10 }
 0x142   : > { %p1396_p8 = pneg %p1395_p6 }
 0x143   : > { %820 = vrot.lane.b32.xlu1 %v1698_v11, %s1492_s18  ;;  %653 = vrot.lane.b32.xlu0 %v1698_v11, %s1493_s29  ;;  %s1757_s18 = scalar_lea.hbm %s1810_s3, %s1146_s22  ;;  %s1502_s29 = smov [#allocation7]  }
 0x147   : > { %818 = vrot.lane.b32.xlu0 %v1698_v11, %s1494_s6  ;;  %s1397_s6 = sshll.u32 %s1502_s29, 4  ;;  %s1398_s6 = int_to_ptr.vmem [resolvable:$false] %s1397_s6 }
 0x148   : > { %p1400_p12 = scmp.lt.s32.totalorder %s1759_s9, %s1398_s6 }
 0x1ad   : > { %v489_v13 = vpop.permute.xlu1 %488  ;;  %v325_v14 = vpop.permute.xlu0 %324 }
 0x1ae   : > { %1182 = vmatpush3.xpose.msk.msra.mxu1 %vm326_vm2, %v325_v14 }
 0x1af   : > { %1186 = vmatprep.subr.mxu1 %v1487_v1 }
 0x1b1   : > { %1184 = vmatmul.mubr.msk.f32.vlgmr.msra.gmra.mrb[0].mxu1 %vm326_vm2, %v1698_v11  ;;  %v491_v15 = vpop.permute.xlu0 %490  ;;  %v656_v16 = vpop.permute.xlu1 %655 }
 0x1b2   : > { %1192 = vmatpush3.xpose.msk.msra.mxu0 %vm326_vm2, %v491_v15  ;;  %1188 = vmatprep.mubr.msk.f32.mxu1 %vm1486_vm0, %v1487_v1 }
 0x1b3   : > { %1201 = vmatprep.subr.mxu0 %v1487_v1 }
 0x1b5   : > { %1194 = vmatmul.mubr.msk.f32.vlgmr.msra.gmra.mrb[2].mxu0 %vm326_vm2, %v489_v13  ;;  %v654_v17 = vpop.permute.xlu0 %653  ;;  %v821_v18 = vpop.permute.xlu1 %820 }
 0x1b6   : > { %1202 = vmatpush3.xpose.msk.msra.mxu0 %vm326_vm2, %v656_v16  ;;  %1203 = vmatprep.mubr.msk.f32.mxu0 %vm1486_vm0, %v1487_v1 }
 0x1b7   : > { %1211 = vmatprep.subr.mxu0 %v1487_v1 }
 0x1b9   : > { %1204 = vmatmul.mubr.msk.f32.vlgmr.msra.gmra.mrb[4].mxu0 %vm326_vm2, %v654_v17  ;;  %v819_v19 = vpop.permute.xlu0 %818 }
 0x1ba   : > { %1212 = vmatpush3.xpose.msk.msra.mxu0 %vm326_vm2, %v821_v18  ;;  %1213 = vmatprep.mubr.msk.f32.mxu0 %vm1486_vm0, %v1487_v1 }
 0x1bd   : > { %1214 = vmatmul.mubr.msk.f32.vlgmr.msra.gmra.mrb[6].mxu0 %vm326_vm2, %v819_v19 }
 0x284   : > { %v397_v20 = vpop.f32.mrb[0].mxu1 }
 0x285   : > { %v1185_v21 = vpop.f32.mrb[1].mxu1  ;;  %v401_v22 = vsel %vm326_vm2, %v397_v20, -inf }
 0x286   : > { %402 = vmax.xlane.f32.xlu1 %v401_v22 }
 0x288   : > { %v562_v23 = vpop.f32.mrb[2].mxu0 }
 0x289   : > { %v1195_v24 = vpop.f32.mrb[3].mxu0  ;;  %v566_v25 = vsel %vm326_vm2, %v562_v23, -inf }
 0x28a   : > { %567 = vmax.xlane.f32.xlu0 %v566_v25 }
 0x28c   : > { %v727_v26 = vpop.f32.mrb[4].mxu0 }
 0x28d   : > { %v1205_v27 = vpop.f32.mrb[5].mxu0  ;;  %v731_v28 = vsel %vm326_vm2, %v727_v26, -inf }
 0x28e   : > { %732 = vmax.xlane.f32.xlu0 %v731_v28 }
 0x290   : > { %v892_v29 = vpop.f32.mrb[6].mxu0 }
 0x291   : > { %v1215_v30 = vpop.f32.mrb[7].mxu0  ;;  %v896_v31 = vsel %vm326_vm2, %v892_v29, -inf }
 0x292   : > { %897 = vmax.xlane.f32.xlu1 %v896_v31 }
 0x2a3   : > { %577 = vrot.lane.b32.xlu1 %v1698_v11, %s1495_s26  ;;  %s1399_s26 = scalar_lea.vmem %s1398_s6, 256 }
 0x2a4   : > { %p1401_p11 = scmp.lt.s32.totalorder %s1399_s26, %s1393_s25 }
 0x2a6   : > { %p1402_p0 = por %p1401_p11, %p1400_p12 }
 0x2a8   : > { %p1403_p5 = pnand %p1402_p0, %p1396_p8 }
 0x313   : > { %v403_v32 = vpop.xlane.xlu1 %402 }
 0x314   : > { %v404_v33 = vsub.f32 %v397_v20, %v403_v32 }
 0x316   : > { %v405_v34 = vmul.f32 1.442695, %v404_v33 }
 0x317   : > { %v568_v35 = vpop.xlane.xlu0 %567 }
 0x318   : > { %1319 = vpow2.f32 %v405_v34  ;;  %v569_v36 = vsub.f32 %v562_v23, %v568_v35 }
 0x31a   : > { %v570_v37 = vmul.f32 1.442695, %v569_v36 }
 0x31b   : > { %v733_v47 = vpop.xlane.xlu0 %732 }
 0x31c   : > { %1321 = vpow2.f32 %v570_v37  ;;  %v734_v48 = vsub.f32 %v727_v26, %v733_v47 }
 0x31e   : > { %v735_v49 = vmul.f32 1.442695, %v734_v48 }
 0x31f   : > { %v898_v38 = vpop.xlane.xlu1 %897 }
 0x320   : > { %v899_v39 = vsub.f32 %v892_v29, %v898_v38 }
 0x322   : > { %v1320_v40 = vpop.eup %1319  ;;  %v900_v41 = vmul.f32 1.442695, %v899_v39 }
 0x323   : > { %v407_v42 = vsel %vm326_vm2, %v1320_v40, 0.0  ;;  %v578_v52 = vpop.permute.xlu1 %577 }
 0x324   : > { %1323 = vpow2.f32 %v900_v41  ;;  %408 = vadd.xlane.f32.xlu0 %v407_v42 }
 0x325   : > { %1325 = vpow2.f32 %v735_v49 }
 0x326   : > { %v1322_v43 = vpop.eup %1321 }
 0x327   : > { %v572_v44 = vsel %vm326_vm2, %v1322_v43, 0.0 }
 0x328   : > { %573 = vadd.xlane.f32.xlu1 %v572_v44 }
 0x32e   : > { %v1324_v45 = vpop.eup %1323 }
 0x32f   : > { %v902_v46 = vsel %vm326_vm2, %v1324_v45, 0.0  ;;  %v1326_v50 = vpop.eup %1325 }
 0x330   : > { %903 = vadd.xlane.f32.xlu1 %v902_v46  ;;  %v737_v51 = vsel %vm326_vm2, %v1326_v50, 0.0 }
 0x33a   : > { %412 = vrot.lane.b32.xlu0 %v1698_v11, %s1496_s7 }
 0x341   : > { %742 = vrot.lane.b32.xlu1 %v1698_v11, %s1497_s8 }
 0x359   : > { %738 = vadd.xlane.f32.xlu0 %v737_v51 }
 0x36f   : > { %907 = vrot.lane.b32.xlu0 %v1698_v11, %s1498_s21 }
 0x3b1   : > { %v409_v53 = vpop.xlane.xlu0 %408 }
 0x3b2   : > { %1327 = vrcp.f32 %v409_v53 }
 0x3b5   : > { %v413_v54 = vpop.permute.xlu0 %412  ;;  %v574_v55 = vpop.xlane.xlu1 %573 }
 0x3b6   : > { %1329 = vrcp.f32 %v574_v55  ;;  %1187 = vmatpush3.msra.mxu1 %v413_v54 }
 0x3b7   : > { %1196 = vmatprep.subr.mxu1 %v1487_v1 }
 0x3bc   : > { %v1328_v56 = vpop.eup %1327 }
 0x3bd   : > { %v411_v57 = vmul.f32 %v1328_v56, %v1320_v40  ;;  %v904_v58 = vpop.xlane.xlu1 %903 }
 0x3bf   : > { %1189 = vmatmul.mubr.msk.f32.vlgmr.msra.gmra.mrb[2].mxu1 %vm326_vm2, %v411_v57 }
 0x3c0   : > { %v1330_v59 = vpop.eup %1329  ;;  %1197 = vmatpush3.msra.mxu1 %v578_v52  ;;  %1198 = vmatprep.mubr.msk.f32.mxu1 %vm1486_vm0, %v1487_v1 }
 0x3c1   : > { %v576_v60 = vmul.f32 %v1330_v59, %v1322_v43  ;;  %v743_v61 = vpop.permute.xlu1 %742  ;;  %1206 = vmatprep.subr.mxu1 %v1487_v1 }
 0x3c3   : > { %1199 = vmatmul.mubr.msk.f32.vlgmr.msra.gmra.mrb[4].mxu1 %vm326_vm2, %v576_v60 }
 0x3c4   : > { %1207 = vmatpush3.msra.mxu1 %v743_v61  ;;  %1208 = vmatprep.mubr.msk.f32.mxu1 %vm1486_vm0, %v1487_v1 }
 0x3c5   : > { %1216 = vmatprep.subr.mxu1 %v1487_v1 }
 0x3e6   : > { %v739_v62 = vpop.xlane.xlu0 %738 }
 0x3e7   : > { %1331 = vrcp.f32 %v739_v62 }
 0x3e8   : > { %1333 = vrcp.f32 %v904_v58 }
 0x3ea   : > { %v908_v3 = vpop.permute.xlu0 %907 }
 0x3f1   : > { %v1332_v63 = vpop.eup %1331 }
 0x3f2   : > { %v741_v0 = vmul.f32 %v1332_v63, %v1326_v50  ;;  %v1334_v2 = vpop.eup %1333 }
 0x3f3   : > { %v906_v4 = vmul.f32 %v1334_v2, %v1324_v45 }
 0x3f4   : > { %1209 = vmatmul.mubr.msk.f32.vlgmr.msra.gmra.mrb[6].mxu1 %vm326_vm2, %v741_v0 }
 0x3f5   : > { %1217 = vmatpush3.msra.mxu1 %v908_v3  ;;  %1218 = vmatprep.mubr.msk.f32.mxu1 %vm1486_vm0, %v1487_v1 }
 0x3f8   : > { %1219 = vmatmul.mubr.msk.f32.vlgmr.msra.gmra.mrb[8].mxu1 %vm326_vm2, %v906_v4 }
 0x492   : > { %v484_v5 = vpop.f32.mrb[2].mxu1 }
 0x493   : > { %v1190_v6 = vpop.f32.mrb[3].mxu1 }
 0x496   : > { %v649_v7 = vpop.f32.mrb[4].mxu1 }
 0x497   : > { %984 = vrot.lane.b32.xlu1 %v649_v7, %s1499_s27  ;;  %v1200_v8 = vpop.f32.mrb[5].mxu1 }
 0x4c7   : > { %v814_v9 = vpop.f32.mrb[6].mxu1 }
 0x4c8   : > { %988 = vrot.lane.b32.xlu0 %v814_v9, %s1500_s4  ;;  %v1210_v10 = vpop.f32.mrb[7].mxu1 }
 0x4cb   : > { %v979_v11 = vpop.f32.mrb[8].mxu1 }
 0x4cc   : > { %992 = vrot.lane.b32.xlu1 %v979_v11, %s1501_s20  ;;  %v1220_v1 = vpop.f32.mrb[9].mxu1 }
 0x509   : > { %v985_v12 = vpop.permute.xlu1 %984 }
 0x50a   : > { %v995_v14 = vsel %vm326_vm2, %v484_v5, %v985_v12 }
 0x53a   : > { %v989_v13 = vpop.permute.xlu0 %988 }
 0x53b   : > { %v997_v15 = vsel %vm996_vm3, %v995_v14, %v989_v13 }
 0x53e   : > { %v993_v16 = vpop.permute.xlu1 %992 }
 0x53f   : > { %v999_v17 = vsel %vm998_vm4, %v997_v15, %v993_v16 }
 0x540   : > { %1000 = vst.msk [vmem:[%s233_s24] sm:$0xff] %vm249_vm1, %v999_v17 }
 0x541   : > { %1406 = shalt.err (!%p1403_p5)
}
 0x542   : > { %s1407_s19 = scalar_lea.hbm %s1757_s18, 128  ;;  %s1411_s21 = scalar_lea.hbm %s1810_s3, 256 }
 0x543   : > { %p1408_p9 = scmp.ne.s32.totalorder %s1757_s18, %s1407_s19  ;;  %p1412_p7 = scmp.lt.u32.totalorder %s1757_s18, %s1810_s3 }
 0x544   : > { %p1413_p3 = scmp.lt.u32.totalorder %s1411_s21, %s1407_s19  ;;  %p1415_p4 = scmp.lt.u32.totalorder %s1407_s19, %s1757_s18 }
 0x545   : > { %p1409_p1 = pnand %p1408_p9, %p1619_p10 }
 0x546   : > { %p1414_p13 = por %p1413_p3, %p1412_p7 }
 0x547   : > { %p1410_p2 = pneg %p1409_p1 }
 0x548   : > { %p1416_p6 = por %p1415_p4, %p1414_p13 }
 0x54a   : > { %p1417_p8 = pnand %p1416_p6, %p1410_p2 }
 0x54c   : > { %1420 = shalt.err (!%p1417_p8)
}
 0x54d   : > { %1233 = dma.vmem_to_hbm [thread:$0]  (%p1619_p10), %s1759_s9, 128, %s1757_s18, %s1002_s15  }
 0x54e PF: > { %s1028_s20 = sand.u32 1, %s1459_s12   ;;  %p1828_p12 = scmp.ne.s32.totalorder %s1818_s23, 0 }
 0x54f   : > { %p1829_p11 = scmp.ge.s32.totalorder %s1479_s17, 2  ;;  %s1029_s22 = scalar_lea.sflag [#allocation4], %s1028_s20 }
 0x551   : > { %p1244_p0 = pnand %p1829_p11, %p1828_p12 }
 0x553   : > { %1454 = dma.done.wait (!%p1244_p0), %s1029_s22, 128  }
 0x554   : > { %1456 = vsyncadd (!%p1244_p0), %s1029_s22, 4294967168  ;;  %s20_s17 = sadd.s32 1, %s1479_s17   ;;  %s1830_s12 = smov %s1463_s13 }
 0x555   : > { %p17_p5 = scmp.ge.s32.totalorder %s20_s17, 4   ;;  %s1831_s13 = smov %s1467_s14 }
 0x556   : > { %s1832_s14 = smov %s1628_s5  ;;  %s1833_s15 = smov %s1475_s16 }
 0x557   : > { %s1834_s16 = smov %s1836_s28  ;;  %19 = sbr.rel (!%p17_p5) target bundleno = 7 (0x7), region = 85 }
 0x55e   :  { %1034 = vsyncpa [#allocation3], 1 }
 0x55f   :  { %1036 = vsyncpa [#allocation3 + $0x1], 1 }
 0x560   :  { %1037 = vsyncpa [#allocation6], 1 }
 0x561   :  { %1038 = vsyncpa [#allocation4], 1 }
 0x562   :  { %1040 = vsyncpa [#allocation4 + $0x1], 1 }

</bundles_post_ra>
